<compile_context>
chip_gen: v7x
topology: tpu7x:2x2x1
jax: 0.10.0
libtpu: 0.0.40
codegen_flags: <defaults>
</compile_context>

<pallas_src>
import jax
import jax.numpy as jnp
from jax.experimental import pallas as pl
from jax.experimental.pallas import tpu as pltpu

LANE = 128  # lane width (packed output slab, gather tile, padding unit)


def _round_up(x, m):
    return ((x + m - 1) // m) * m


def _pick_tb(batch):
    """Largest multiple-of-8 divisor of `batch` that keeps >= 2 grid steps
    (v7x megacore sharding of the 'parallel' batch axis), capped at 512 rows."""
    if batch % 8 != 0:
        return batch  # single full-batch block (block dim == full dim is allowed)
    best = 8
    t = 8
    while t <= min(batch // 2, 512):
        if batch % t == 0:
            best = t
        t += 8
    return best


def _make_head_kernel(with_labels: bool, tb: int, s_pad: int, v_pad: int):
    """Builds the kernel specialized on whether labels (loss path) are present."""

    def kernel(ids_ref, mask_ref, *rest):
        if with_labels:
            labels_ref, score_ref, b_ref, out_ref = rest
        else:
            score_ref, b_ref, out_ref = rest

        ids = ids_ref[...]     # [TB, S_pad] int32 (padding positions hold id 0)
        mask = mask_ref[...]   # [TB, S_pad] f32   (padding positions hold 0.0)
        score = score_ref[...] # [1, V_pad]  f32   (hoisted embedding @ cls_w)

        # 1) Per-token score gather: z[b, s] = vocab_score[ids[b, s]].
        if v_pad == LANE:
            # Lane dynamic-gather: src and idx are the same [rows, 128] shape, so
            # this lowers to a per-sublane lane shuffle (no [TB,S,V] intermediates,
            # no VALU compare storm).
            rows = tb * (s_pad // LANE)
            idx = ids.reshape(rows, LANE)
            src = jnp.broadcast_to(score, (rows, LANE))
            z = jnp.take_along_axis(src, idx, axis=1).reshape(tb, s_pad)
        else:
            # TODO(synk): for vocabularies wider than one 128-lane vreg, switch to
            # scalar-prefetched ids + DMA row gather of the score vector; this
            # one-hot fallback is O(TB*S*V) and only kept for completeness.
            v_iota = jax.lax.broadcasted_iota(jnp.int32, (tb, s_pad, v_pad), 2)
            onehot = ids[:, :, None] == v_iota
            z = jnp.sum(jnp.where(onehot, score[None, :, :], 0.0), axis=-1)

        # 2) Attention-mask-weighted mean over seq (+ bias) -> logits [TB, 1].
        num = jnp.sum(z * mask, axis=1, keepdims=True)
        den = jnp.maximum(jnp.sum(mask, axis=1, keepdims=True), 1e-9)
        logits = num / den + b_ref[0, 0]               # bias scalar from SMEM

        # 3) sigmoid and (optionally) stable BCE, sharing one exp on the EUP.
        e = jnp.exp(-jnp.abs(logits))                  # [TB, 1]
        inv = 1.0 / (1.0 + e)
        probs = jnp.where(logits >= 0.0, inv, e * inv)

        lane = jax.lax.broadcasted_iota(jnp.int32, (tb, LANE), 1)
        if with_labels:
            y = labels_ref[...]                        # [TB, 1]
            per_ex = jnp.maximum(logits, 0.0) - logits * y + jnp.log1p(e)
            out = jnp.where(lane == 0, probs, jnp.where(lane == 1, per_ex, 0.0))
        else:
            out = jnp.where(lane == 0, probs, 0.0)
        out_ref[...] = out                             # lane-dense unmasked store

    return kernel


def binary_model_forward(input_ids, attention_mask, labels, params):
    """Mirrors Model.forward: returns (loss, probs) if labels given else probs."""
    emb = params["embedding"].astype(jnp.float32)      # [V, H]
    w = params["cls_w"].astype(jnp.float32)            # [H, 1]
    b = params["cls_b"].reshape(1, 1).astype(jnp.float32)

    V, H = emb.shape
    B, S = input_ids.shape

    # --- Hoisted head fold (done ONCE per call, not per grid step): the 1-column
    # classifier is folded into the table outside the kernel by linearity.
    vocab_score = (emb @ w).reshape(1, V)              # [1, V] f32
    V_pad = _round_up(V, LANE)
    if V_pad != V:
        vocab_score = jnp.pad(vocab_score, ((0, 0), (0, V_pad - V)))

    # --- Lane-dense token stream: pad S to a multiple of 128.  Padded ids are 0
    # (a valid row) and padded mask entries are 0, so they never contribute.
    S_pad = _round_up(S, LANE)
    ids = input_ids.astype(jnp.int32)
    mask_f = attention_mask.astype(jnp.float32)
    if S_pad != S:
        ids = jnp.pad(ids, ((0, 0), (0, S_pad - S)))
        mask_f = jnp.pad(mask_f, ((0, 0), (0, S_pad - S)))

    TB = _pick_tb(B)                                   # batch tile
    grid = (B // TB,)

    def row_spec(shape):
        return pl.BlockSpec(shape, lambda i: (i, 0))

    def bcast_spec(shape):
        return pl.BlockSpec(shape, lambda i: (0, 0))

    smem_spec = pl.BlockSpec(memory_space=pltpu.MemorySpace.SMEM)

    with_labels = labels is not None
    kernel = _make_head_kernel(with_labels, TB, S_pad, V_pad)

    in_specs = [row_spec((TB, S_pad)), row_spec((TB, S_pad))]
    args = [ids, mask_f]
    if with_labels:
        labels_in = labels.reshape(B, 1).astype(jnp.float32)   # unsqueeze(1)
        in_specs.append(row_spec((TB, 1)))
        args.append(labels_in)
    in_specs += [bcast_spec((1, V_pad)), smem_spec]
    args += [vocab_score, b]

    out = pl.pallas_call(
        kernel,
        grid=grid,
        in_specs=in_specs,
        out_specs=pl.BlockSpec((TB, LANE), lambda i: (i, 0)),
        out_shape=jax.ShapeDtypeStruct((B, LANE), jnp.float32),
        compiler_params=pltpu.CompilerParams(
            dimension_semantics=("parallel",)),        # megacore on v7x
    )(*args)

    probs = out[:, 0:1]                                # [B, 1]
    if with_labels:
        loss = jnp.mean(out[:, 1])                     # BCE mean over B
        return loss, probs
    return probs


def init_params(key, vocab_size, hidden):
    k0, k1, k2 = jax.random.split(key, 3)
    return {
        "embedding": 0.02 * jax.random.normal(k0, (vocab_size, hidden), jnp.float32),
        "cls_w": 0.02 * jax.random.normal(k1, (hidden, 1), jnp.float32),
        "cls_b": 0.02 * jax.random.normal(k2, (1, 1), jnp.float32),
    }


def _reference(input_ids, attention_mask, labels, params):
    """Pure-JAX reference of the same synthetic model (pool-then-dot order)."""
    x = params["embedding"][input_ids]                 # [B, S, H]
    m = attention_mask.astype(jnp.float32)
    pooled = (x * m[:, :, None]).sum(1) / jnp.maximum(m.sum(1, keepdims=True), 1e-9)
    logits = pooled @ params["cls_w"] + params["cls_b"].reshape(1, 1)
    probs = jax.nn.sigmoid(logits)
    y = labels.reshape(-1, 1)
    per = jnp.maximum(logits, 0.0) - logits * y + jnp.log1p(jnp.exp(-jnp.abs(logits)))
    return jnp.mean(per), probs


if __name__ == "__main__":
    B, S, H, V = 16, 16, 128, 64

    key = jax.random.PRNGKey(0)
    k_param, k_ids, k_len, k_lab = jax.random.split(key, 4)

    params = init_params(k_param, V, H)

    input_ids = jax.random.randint(k_ids, (B, S), 0, V, dtype=jnp.int32)
    lengths = jax.random.randint(k_len, (B,), 4, S + 1, dtype=jnp.int32)
    attention_mask = (jnp.arange(S)[None, :] < lengths[:, None]).astype(jnp.int32)
    labels = jax.random.bernoulli(k_lab, 0.5, (B,)).astype(jnp.float32)

    # With labels -> (loss, probs); without -> probs (matches the PyTorch module).
    loss, probs = binary_model_forward(input_ids, attention_mask, labels, params)
    probs_only = binary_model_forward(input_ids, attention_mask, None, params)
    jax.block_until_ready((loss, probs, probs_only))

    # Correctness vs. pure-JAX reference (dot-before-pool reorder is exact by linearity).
    ref_loss, ref_probs = _reference(input_ids, attention_mask, labels, params)
    assert probs.shape == (B, 1)
    assert probs_only.shape == (B, 1)
    assert loss.shape == ()
    assert bool(jnp.all((probs >= 0.0) & (probs <= 1.0)))
    assert bool(jnp.all(jnp.isfinite(probs)) and jnp.isfinite(loss))
    assert bool(jnp.allclose(probs, ref_probs, atol=1e-5, rtol=1e-5))
    assert bool(jnp.allclose(probs_only, probs, atol=1e-6, rtol=1e-6))
    assert bool(jnp.allclose(loss, ref_loss, atol=1e-5, rtol=1e-5))

    print("KERNEL_OK")
</pallas_src>

<mosaic_0001>
module attributes {stable_mosaic.version = 11 : i64} {
  func.func @kernel(%arg0: i32, %arg1: memref<8x128xi32, #tpu.memory_space<vmem>>, %arg2: memref<8x128xf32, #tpu.memory_space<vmem>>, %arg3: memref<8x1xf32, #tpu.memory_space<vmem>>, %arg4: memref<1x128xf32, #tpu.memory_space<vmem>>, %arg5: memref<1x1xf32, #tpu.memory_space<smem>>, %arg6: memref<8x128xf32, #tpu.memory_space<vmem>>) attributes {dimension_semantics = [#tpu.dimension_semantics<parallel>], iteration_bounds = array<i64: 2>, scalar_prefetch = 0 : i64, scratch_operands = 0 : i64, tpu.core_type = #tpu.core_type<tc>, window_params = [{transform_indices = @transform_0, window_bounds = array<i64: 8, 128>}, {transform_indices = @transform_1, window_bounds = array<i64: 8, 128>}, {transform_indices = @transform_2, window_bounds = array<i64: 8, 1>}, {pipeline_mode = #tpu.pipeline_mode<synchronous>, transform_indices = @transform_3, window_bounds = array<i64: 1, 128>}, {transform_indices = @transform_4, window_bounds = array<i64: 1, 1>}, {transform_indices = @transform_5, window_bounds = array<i64: 8, 128>}]} {
    %c0 = arith.constant 0 : index
    %c0_0 = arith.constant 0 : index
    %0 = vector.load %arg1[%c0, %c0_0] : memref<8x128xi32, #tpu.memory_space<vmem>>, vector<8x128xi32>
    %c0_1 = arith.constant 0 : index
    %c0_2 = arith.constant 0 : index
    %1 = vector.load %arg2[%c0_1, %c0_2] : memref<8x128xf32, #tpu.memory_space<vmem>>, vector<8x128xf32>
    %c0_3 = arith.constant 0 : index
    %c0_4 = arith.constant 0 : index
    %2 = vector.load %arg4[%c0_3, %c0_4] : memref<1x128xf32, #tpu.memory_space<vmem>>, vector<1x128xf32>
    %3 = vector.shape_cast %2 : vector<1x128xf32> to vector<1x128xf32>
    %4 = vector.broadcast %3 : vector<1x128xf32> to vector<8x128xf32>
    %c0_i32 = arith.constant 0 : i32
    %5 = vector.broadcast %c0_i32 : i32 to vector<8x128xi32>
    %6 = arith.cmpi slt, %0, %5 : vector<8x128xi32>
    %c128_i32 = arith.constant 128 : i32
    %7 = vector.broadcast %c128_i32 : i32 to vector<8x128xi32>
    %8 = arith.addi %0, %7 : vector<8x128xi32>
    %9 = arith.select %6, %8, %0 : vector<8x128xi1>, vector<8x128xi32>
    %10 = vector.shape_cast %9 : vector<8x128xi32> to vector<8x128x1xi32>
    %11 = vector.shape_cast %10 : vector<8x128x1xi32> to vector<8x128xi32>
    %12 = tpu.dynamic_gather %4[%11] in [1] : vector<8x128xf32>, vector<8x128xi32> -> vector<8x128xf32>
    %13 = arith.mulf %12, %1 : vector<8x128xf32>
    %cst = arith.constant dense<0.000000e+00> : vector<8xf32>
    %14 = vector.multi_reduction <add>, %13, %cst [1] : vector<8x128xf32> to vector<8xf32>
    %15 = vector.shape_cast %14 : vector<8xf32> to vector<8x1xf32>
    %cst_5 = arith.constant dense<0.000000e+00> : vector<8xf32>
    %16 = vector.multi_reduction <add>, %1, %cst_5 [1] : vector<8x128xf32> to vector<8xf32>
    %17 = vector.shape_cast %16 : vector<8xf32> to vector<8x1xf32>
    %cst_6 = arith.constant 9.99999971E-10 : f32
    %18 = vector.broadcast %cst_6 : f32 to vector<8x1xf32>
    %19 = arith.maximumf %17, %18 : vector<8x1xf32>
    %20 = arith.divf %15, %19 : vector<8x1xf32>
    %c0_7 = arith.constant 0 : index
    %c0_8 = arith.constant 0 : index
    %21 = memref.load %arg5[%c0_7, %c0_8] : memref<1x1xf32, #tpu.memory_space<smem>>
    %22 = vector.broadcast %21 : f32 to vector<8x1xf32>
    %23 = arith.addf %20, %22 : vector<8x1xf32>
    %24 = math.absf %23 : vector<8x1xf32>
    %cst_9 = arith.constant 0.000000e+00 : f32
    %25 = vector.broadcast %cst_9 : f32 to vector<8x1xf32>
    %26 = arith.subf %25, %24 : vector<8x1xf32>
    %27 = math.exp %26 : vector<8x1xf32>
    %cst_10 = arith.constant 1.000000e+00 : f32
    %28 = vector.broadcast %cst_10 : f32 to vector<8x1xf32>
    %29 = arith.addf %28, %27 : vector<8x1xf32>
    %cst_11 = arith.constant 1.000000e+00 : f32
    %30 = vector.broadcast %cst_11 : f32 to vector<8x1xf32>
    %31 = arith.divf %30, %29 : vector<8x1xf32>
    %cst_12 = arith.constant 0.000000e+00 : f32
    %32 = vector.broadcast %cst_12 : f32 to vector<8x1xf32>
    %33 = arith.cmpf oge, %23, %32 : vector<8x1xf32>
    %34 = arith.mulf %27, %31 : vector<8x1xf32>
    %35 = arith.select %33, %31, %34 : vector<8x1xi1>, vector<8x1xf32>
    %36 = tpu.iota {dimensions = array<i32: 1>} : vector<8x128xi32>
    %c0_13 = arith.constant 0 : index
    %c0_14 = arith.constant 0 : index
    %37 = vector.load %arg3[%c0_13, %c0_14] : memref<8x1xf32, #tpu.memory_space<vmem>>, vector<8x1xf32>
    %cst_15 = arith.constant 0.000000e+00 : f32
    %38 = vector.broadcast %cst_15 : f32 to vector<8x1xf32>
    %39 = arith.maximumf %23, %38 : vector<8x1xf32>
    %40 = arith.mulf %23, %37 : vector<8x1xf32>
    %41 = arith.subf %39, %40 : vector<8x1xf32>
    %42 = math.log1p %27 : vector<8x1xf32>
    %43 = arith.addf %41, %42 : vector<8x1xf32>
    %c0_i32_16 = arith.constant 0 : i32
    %44 = vector.broadcast %c0_i32_16 : i32 to vector<8x128xi32>
    %45 = arith.cmpi eq, %36, %44 : vector<8x128xi32>
    %c1_i32 = arith.constant 1 : i32
    %46 = vector.broadcast %c1_i32 : i32 to vector<8x128xi32>
    %47 = arith.cmpi eq, %36, %46 : vector<8x128xi32>
    %cst_17 = arith.constant 0.000000e+00 : f32
    %48 = vector.shape_cast %43 : vector<8x1xf32> to vector<8x1xf32>
    %49 = vector.broadcast %48 : vector<8x1xf32> to vector<8x128xf32>
    %50 = vector.broadcast %cst_17 : f32 to vector<8x128xf32>
    %51 = arith.select %47, %49, %50 : vector<8x128xi1>, vector<8x128xf32>
    %52 = vector.shape_cast %35 : vector<8x1xf32> to vector<8x1xf32>
    %53 = vector.broadcast %52 : vector<8x1xf32> to vector<8x128xf32>
    %54 = arith.select %45, %53, %51 : vector<8x128xi1>, vector<8x128xf32>
    %c0_18 = arith.constant 0 : index
    %c0_19 = arith.constant 0 : index
    %55 = vector.load %arg6[%c0_18, %c0_19] : memref<8x128xf32, #tpu.memory_space<vmem>>, vector<8x128xf32>
    tpu.vector_store %arg6[%c0_18, %c0_19], %54 {strides = array<i32>} : memref<8x128xf32, #tpu.memory_space<vmem>>, vector<8x128xf32>,
    return
  }
  func.func @transform_0(%arg0: i32) -> (i32, i32) {
    %c0_i32 = arith.constant 0 : i32
    %c0_i32_0 = arith.constant 0 : i32
    return %arg0, %c0_i32 : i32, i32
  }
  func.func @transform_1(%arg0: i32) -> (i32, i32) {
    %c0_i32 = arith.constant 0 : i32
    %c0_i32_0 = arith.constant 0 : i32
    return %arg0, %c0_i32 : i32, i32
  }
  func.func @transform_2(%arg0: i32) -> (i32, i32) {
    %c0_i32 = arith.constant 0 : i32
    %c0_i32_0 = arith.constant 0 : i32
    return %arg0, %c0_i32 : i32, i32
  }
  func.func @transform_3(%arg0: i32) -> (i32, i32) {
    %c0_i32 = arith.constant 0 : i32
    %c0_i32_0 = arith.constant 0 : i32
    %c0_i32_1 = arith.constant 0 : i32
    return %c0_i32, %c0_i32_0 : i32, i32
  }
  func.func @transform_4(%arg0: i32) -> (i32, i32) {
    %c0_i32 = arith.constant 0 : i32
    %c0_i32_0 = arith.constant 0 : i32
    %c0_i32_1 = arith.constant 0 : i32
    return %c0_i32, %c0_i32_0 : i32, i32
  }
  func.func @transform_5(%arg0: i32) -> (i32, i32) {
    %c0_i32 = arith.constant 0 : i32
    %c0_i32_0 = arith.constant 0 : i32
    return %arg0, %c0_i32 : i32, i32
  }
}

</mosaic_0001>

<bundles_post_ra>
// kernel: tpu_custom_call.1
= control target key start
LH: loop header
LB: loop body
LE: loop exit
PB: predicated region body
PF: predicated region fallthrough
CT: control target
= control target key end

     0   :  { %s835_s0 = inlined_call_operand.vmem [shape: s32[16,128], index: 0, kind: input, shape index: {}]   ;;  %s836_s1 = inlined_call_operand.hbm [shape: f32[16,128], index: 1, kind: input, shape index: {}]   ;;  %s837_s2 = inlined_call_operand.vmem [shape: f32[16,1], index: 2, kind: input, shape index: {}]   ;;  %s838_s3 = inlined_call_operand.vmem [shape: f32[1,128], index: 3, kind: input, shape index: {}]   ;;  %s839_s4 = inlined_call_operand.<no memory space> [shape: f32[1,1], index: 4, kind: input, shape index: {}]   ;;  %s840_s5 = inlined_call_operand.hbm [shape: f32[16,128], index: 5, kind: output, shape index: {}]  }
   0x1   :  { %10 = sst [smem:[#allocation2]] %s839_s4 }
   0x2   :  { %11 = vsyncpa [#allocation4], 0 }
   0x3   :  { %13 = vsyncpa [#allocation4 + $0x1], 0 }
   0x4   :  { %14 = vsyncpa [#allocation5], 0 }
   0x5   :  { %16 = vsyncpa [#allocation5 + $0x1], 0  ;;  %s652_s20 = smov 0   ;;  %s654_s21 = smov 0  }
   0x6   :  { %s656_s22 = smov 0   ;;  %s658_s23 = smov 0  }
   0x7 LB: > { %s673_s4 = sadd.s32 4294967295, %s614_s23   ;;  %s445_s24 = sadd.s32 4294967294, %s614_s23   ;;  %s614_s23 = sphi %s658_s23, %s855_s23   ;;  %s610_s22 = sphi %s656_s22, %s854_s22   ;;  %s606_s21 = sphi %s654_s21, %s853_s21   ;;  %s602_s20 = sphi %s652_s20, %s852_s20  }
   0x8   : > { %s677_s25 = sadd.s32 1, %s614_s23   ;;  %s55_s26 = sadd.s32 1, %s610_s22 }
   0x9   : > { %s52_s27 = ssub.s32 %s614_s23, %s677_s25  ;;  %p62_p0 = scmp.ne.s32.totalorder %s610_s22, %s606_s21 }
   0xa   : > { %p53_p1 = scmp.eq.s32.totalorder %s52_s27, 0  ;;  %p63_p2 = scmp.eq.s32.totalorder %s614_s23, 0 }
   0xb   : > { %p68_p3 = scmp.ne.s32.totalorder %s606_s21, %s602_s20  ;;  %p69_p4 = scmp.eq.s32.totalorder %s673_s4, 0 }
   0xc   : > { %s689_s28 = scalar_select %p53_p1, %s610_s22, %s55_s26  }
   0xd   : > { %p691_p5 = por %p63_p2, %p62_p0  ;;  %p695_p6 = por %p69_p4, %p68_p3 }
   0xe   : > { %p160_p7 = scmp.eq.s32.totalorder %s673_s4, 1  ;;  %p166_p8 = scmp.eq.s32.totalorder %s445_s24, 1 }
   0xf   : > { %p472_p10 = scmp.lt.s32.totalorder %s614_s23, 2  ;;  %s199_s8 = sand.u32 1, %s610_s22  }
  0x10   : > { %p702_p11 = por %p160_p7, %p62_p0  ;;  %p706_p12 = por %p166_p8, %p68_p3 }
  0x11   : > { %s449_s9 = sshll.u32 %s614_s23, 7  ;;  %s448_s10 = sshll.u32 %s199_s8, 3 }
  0x12   : > { %s844_s6 = scalar_select %p702_p11, 1, 0 }
  0x13   : > { %s845_s7 = scalar_select %p706_p12, 1, 0 }
  0x14   : > { %s715_s13 = scalar_lea.hbm %s836_s1, %s449_s9  ;;  %s203_s14 = scalar_lea.vmem [#allocation3], %s448_s10 }
  0x15   : > { %s210_s15 = sshll.u32 %s203_s14, 4  ;;  %p719_p13 = pnand %p472_p10, %p691_p5  ;;  %s723_s15 = int_to_ptr.vmem [resolvable:$true] %s210_s15 }
  0x16   : > { %s200_s17 = scalar_lea.sflag [#allocation4], %s199_s8  ;;  %s518_s18 = scalar_lea.hbm %s715_s13, 128 }
  0x17   : > { %p519_p2 = scmp.ne.s32.totalorder %s715_s13, %s518_s18  ;;  %p520_p3 = pneg %p719_p13 }
  0x18   : > { %s523_s26 = scalar_lea.hbm %s836_s1, 256  ;;  %p524_p5 = scmp.lt.u32.totalorder %s715_s13, %s836_s1 }
  0x19   : > { %p521_p4 = pnand %p520_p3, %p519_p2  ;;  %p525_p8 = scmp.lt.u32.totalorder %s523_s26, %s518_s18 }
  0x1a   : > { %p527_p9 = scmp.lt.u32.totalorder %s518_s18, %s715_s13 }
  0x1b   : > { %p522_p7 = pneg %p521_p4  ;;  %p526_p10 = por %p525_p8, %p524_p5 }
  0x1d   : > { %p528_p0 = por %p527_p9, %p526_p10 }
  0x1f   : > { %p529_p1 = pnand %p528_p0, %p522_p7 }
  0x21   : > { %532 = shalt.err (!%p529_p1)
}
  0x22   : > { %s533_s8 = scalar_lea.vmem %s723_s15, 128  ;;  %s616_s9 = smov [#allocation3]  }
  0x23   : > { %p534_p2 = scmp.ne.s32.totalorder %s723_s15, %s533_s8  ;;  %s538_s10 = sshll.u32 %s616_s9, 4  ;;  %s539_s10 = int_to_ptr.vmem [resolvable:$false] %s538_s10 }
  0x24   : > { %s540_s11 = scalar_lea.vmem %s539_s10, 256  ;;  %p541_p11 = scmp.lt.s32.totalorder %s723_s15, %s539_s10 }
  0x25   : > { %p536_p4 = pnand %p534_p2, %p520_p3  ;;  %p542_p5 = scmp.lt.s32.totalorder %s540_s11, %s533_s8 }
  0x27   : > { %p537_p12 = pneg %p536_p4  ;;  %p543_p8 = por %p542_p5, %p541_p11 }
  0x29   : > { %p544_p9 = pnand %p543_p8, %p537_p12 }
  0x2b   : > { %547 = shalt.err (!%p544_p9)
}
  0x2c   : > { %467 = dma.hbm_to_vmem [thread:$0]  (!%p719_p13), %s715_s13, 128, %s723_s15, %s200_s17  }
  0x2d   : > { %p847_p0 = scmp.lt.s32.totalorder %s614_s23, 3  ;;  %p848_p1 = scmp.ge.s32.totalorder %s614_s23, 1 }
  0x2f   : > { %p223_p3 = pnand %p848_p1, %p847_p0 }
  0x30   : > { %s757_s12 = sand.u32 (!%p223_p3), 1, %s606_s21  }
  0x31   : > { %226 = sbr.rel (%p223_p3) target bundleno = 526 (0x20e), region = 40  ;;  %s451_s14 = sshll.u32 (!%p223_p3), %s757_s12, 3 }
  0x32   : > { %s229_s18 = scalar_lea.sflag (!%p223_p3), [#allocation4], %s757_s12  ;;  %s232_s16 = scalar_lea.vmem (!%p223_p3), [#allocation3], %s451_s14 }
  0x38   : > { %593 = dma.done.wait (%p695_p6), %s229_s18, 128  }
  0x39   : > { %595 = vsyncadd (%p695_p6), %s229_s18, 4294967168  ;;  %p267_p11 = scmp.lt.s32.totalorder %s673_s4, 1  ;;  %v455_v3 = vld [vmem:[%s838_s3] ss:$0 sm:$0xff]  ;;  %v617_v7 = vmov 0   ;;  %s298_s27 = sld [smem:[#allocation2]]  ;;  %v311_v35 = vlaneseq }
  0x3a   : > { %v276_v4 = vld [vmem:[%s232_s16] sm:$0xff]  ;;  %508 = vset.pattern.permute.xlu1 %v617_v7  ;;  %s457_s10 = sshll.u32 %s673_s4, 7  ;;  %s266_s11 = scalar_lea.vmem [#allocation6], %s451_s14 }
  0x3b   : > { %s769_s13 = scalar_select %p267_p11, %s673_s4, 1  ;;  %v312_v36 = vand.u32 127, %v311_v35 }
  0x3c   : > { %s351_s18 = sshll.u32 %s266_s11, 4  ;;  %s338_s17 = scalar_lea.sflag [#allocation5], %s757_s12  ;;  %s793_s18 = int_to_ptr.vmem [resolvable:$true] %s351_s18 }
  0x3d   : > { %s453_s15 = sshll.u32 %s769_s13, 3  ;;  %vm328_vm3 = vcmp.eq.s32.totalorder %v312_v36, 1  ;;  %vm327_vm4 = vcmp.eq.s32.totalorder %v312_v36, 0  ;;  %s548_s4 = scalar_lea.vmem %s793_s18, 128 }
  0x3e   : > { %s270_s24 = scalar_lea.vmem %s835_s0, %s453_s15  ;;  %s274_s9 = scalar_lea.vmem %s837_s2, %s453_s15 }
  0x3f   : > { %v275_v0 = vld [vmem:[%s270_s24] sm:$0xff]  ;;  %v299_v11 = vstv %s298_s27  ;;  %s791_s15 = scalar_lea.hbm %s840_s5, %s457_s10  ;;  %p549_p6 = scmp.ne.s32.totalorder %s793_s18, %s548_s4 }
  0x40   : > { %vm284_vm0 = vcmp.lt.s32.totalorder %v275_v0, 0  ;;  %v285_v1 = vadd.s32 128, %v275_v0  ;;  %v313_v21 = vld [vmem:[%s274_s9] sm:$0xff]  ;;  %p849_p12 = scmp.ne.s32.totalorder %s844_s6, 0  ;;  %s618_s14 = smov [#allocation6]  }
  0x41   : > { %s552_s19 = sshll.u32 %s618_s14, 4  ;;  %s553_s19 = int_to_ptr.vmem [resolvable:$false] %s552_s19 }
  0x42   : > { %v286_v2 = vsel %vm284_vm0, %v285_v1, %v275_v0  ;;  %p550_p13 = pnand %p549_p6, %p849_p12  ;;  %s554_s24 = scalar_lea.vmem %s553_s19, 256 }
  0x43   : > { %507 = vset.pattern.permute.xlu0 %v286_v2  ;;  %p555_p10 = scmp.lt.s32.totalorder %s793_s18, %s553_s19  ;;  %p556_p2 = scmp.lt.s32.totalorder %s554_s24, %s548_s4 }
  0x44   : > { %p551_p7 = pneg %p550_p13 }
  0x45   : > { %p557_p4 = por %p556_p2, %p555_p10 }
  0x47   : > { %288 = vperm.xlu0 %507, %v455_v3   ;;  %p558_p5 = pnand %p557_p4, %p551_p7 }
  0x4b   : > { %509 = vset.pattern.permute.xlu0 %v617_v7 }
  0x66   : > { %293 = vadd.xlane.f32.xlu0 %v276_v4 }
  0xc6   : > { %v289_v5 = vpop.permute.xlu0 %288 }
  0xc7   : > { %v290_v6 = vmul.f32 %v289_v5, %v276_v4 }
  0xc9   : > { %291 = vadd.xlane.f32.xlu1 %v290_v6 }
  0xf3   : > { %v294_v8 = vpop.xlane.xlu0 %293 }
  0xf4   : > { %v295_v9 = vmax.f32 %v294_v8, 1e-09 }
  0xf6   : > { %510 = vrcp.f32 %v295_v9 }
 0x100   : > { %v511_v10 = vpop.eup %510 }
 0x156   : > { %v292_v12 = vpop.xlane.xlu1 %291 }
 0x157   : > { %v297_v13 = vmul.f32 %v511_v10, %v292_v12 }
 0x159   : > { %v300_v14 = vadd.f32 %v299_v11, %v297_v13 }
 0x15b   : > { %v301_v15 = vand.u32 2147483647, %v300_v14  ;;  %v314_v23 = vmax.f32 %v300_v14, 0.0  ;;  %v315_v24 = vmul.f32 %v313_v21, %v300_v14  ;;  %vm308_vm2 = vcmp.ge.f32.partialorder %v300_v14, 0.0 }
 0x15d   : > { %v302_v16 = vsub.f32 0.0, %v301_v15  ;;  %v316_v30 = vsub.f32 %v314_v23, %v315_v24 }
 0x15f   : > { %v303_v17 = vmul.f32 1.442695, %v302_v16 }
 0x161   : > { %512 = vpow2.f32 %v303_v17 }
 0x16b   : > { %v513_v18 = vpop.eup %512 }
 0x16c   : > { %v305_v19 = vadd.f32 1.0, %v513_v18  ;;  %v320_v20 = vmul.f32 -0.5, %v513_v18  ;;  %v323_v25 = vand.u32 2147483647, %v513_v18 }
 0x16e   : > { %514 = vlog2.f32 %v305_v19  ;;  %v321_v22 = vadd.f32 1.0, %v320_v20  ;;  %vm324_vm1 = vcmp.lt.f32.partialorder %v323_v25, 0.0004427343 }
 0x16f   : > { %516 = vrcp.f32 %v305_v19 }
 0x170   : > { %v322_v29 = vmul.f32 %v513_v18, %v321_v22 }
 0x178   : > { %v515_v26 = vpop.eup %514 }
 0x179   : > { %v517_v27 = vpop.eup %516  ;;  %v319_v28 = vmul.f32 0.6931472, %v515_v26 }
 0x17a   : > { %v309_v31 = vmul.f32 %v517_v27, %v513_v18 }
 0x17b   : > { %v325_v32 = vsel %vm324_vm1, %v322_v29, %v319_v28 }
 0x17c   : > { %v326_v33 = vadd.f32 %v325_v32, %v316_v30  ;;  %v310_v34 = vsel %vm308_vm2, %v517_v27, %v309_v31 }
 0x17e   : > { %331 = vperm.xlu1 %508, %v326_v33  }
 0x1fd   : > { %v332_v37 = vpop.permute.xlu1 %331 }
 0x1fe   : > { %v334_v38 = vsel %vm328_vm3, %v332_v37, 0.0 }
 0x1ff   : > { %v335_v39 = vsel %vm327_vm4, %v310_v34, %v334_v38 }
 0x200   : > { %336 = vst [vmem:[%s266_s11] sm:$0xff] %v335_v39 }
 0x201   : > { %561 = shalt.err (!%p558_p5)
}
 0x202   : > { %s562_s12 = scalar_lea.hbm %s791_s15, 128  ;;  %s566_s27 = scalar_lea.hbm %s840_s5, 256 }
 0x203   : > { %p563_p8 = scmp.ne.s32.totalorder %s791_s15, %s562_s12  ;;  %p567_p1 = scmp.lt.u32.totalorder %s791_s15, %s840_s5 }
 0x204   : > { %p568_p3 = scmp.lt.u32.totalorder %s566_s27, %s562_s12  ;;  %p570_p6 = scmp.lt.u32.totalorder %s562_s12, %s791_s15 }
 0x205   : > { %p564_p9 = pnand %p563_p8, %p849_p12 }
 0x206   : > { %p569_p11 = por %p568_p3, %p567_p1 }
 0x207   : > { %p565_p0 = pneg %p564_p9 }
 0x208   : > { %p571_p13 = por %p570_p6, %p569_p11 }
 0x20a   : > { %p572_p7 = pnand %p571_p13, %p565_p0 }
 0x20c   : > { %575 = shalt.err (!%p572_p7)
}
 0x20d   : > { %462 = dma.vmem_to_hbm [thread:$0]  (%p849_p12), %s793_s18, 128, %s791_s15, %s338_s17  }
 0x20e PF: > { %s363_s9 = sand.u32 1, %s602_s20   ;;  %p850_p10 = scmp.ne.s32.totalorder %s845_s7, 0 }
 0x20f   : > { %p851_p2 = scmp.ge.s32.totalorder %s614_s23, 2  ;;  %s364_s10 = scalar_lea.sflag [#allocation5], %s363_s9 }
 0x211   : > { %p469_p4 = pnand %p851_p2, %p850_p10 }
 0x213   : > { %597 = dma.done.wait (!%p469_p4), %s364_s10, 128  }
 0x214   : > { %599 = vsyncadd (!%p469_p4), %s364_s10, 4294967168  ;;  %p19_p5 = scmp.ge.s32.totalorder %s677_s25, 4   ;;  %s852_s20 = smov %s606_s21 }
 0x215   : > { %s853_s21 = smov %s610_s22  ;;  %s854_s22 = smov %s689_s28 }
 0x216   : > { %s855_s23 = smov %s677_s25  ;;  %21 = sbr.rel (!%p19_p5) target bundleno = 7 (0x7), region = 91 }
 0x21d   :  { %369 = vsyncpa [#allocation4], 1 }
 0x21e   :  { %371 = vsyncpa [#allocation4 + $0x1], 1 }
 0x21f   :  { %372 = vsyncpa [#allocation5], 1 }
 0x220   :  { %374 = vsyncpa [#allocation5 + $0x1], 1 }

</bundles_post_ra>
